<compile_context>
chip_gen: v5e
topology: v5e:2x2
jax: 0.10.0
libtpu: 0.0.40
codegen_flags: <defaults>
</compile_context>

<pallas_src>
import jax
import jax.numpy as jnp
from jax.experimental import pallas as pl
from jax.experimental.pallas import tpu as pltpu


def _round_up(x, m):
    return (x + m - 1) // m * m


def w2v_kernel(e_ref, w_ref, b_ref, out_ref):
    # e_ref  : (TN, D)  bf16  gathered embeddings for this token tile
    # w_ref  : (TV, D)  bf16  linear-weight slab (PyTorch (out_features, in_features))
    # b_ref  : (1, TV)  f32   bias slab
    # out_ref: (TN, TV) f32   logits tile
    logits = jax.lax.dot_general(
        e_ref[...], w_ref[...],
        dimension_numbers=(((1,), (1,)), ((), ())),     # contract over emb_dim
        preferred_element_type=jnp.float32)             # f32 accumulation on MXU
    out_ref[...] = logits + b_ref[...]


def word2vec_forward(x, emb_table, w, b, *, tn=256, tv=1024,
                     param_dtype=jnp.bfloat16):
    """x: (B, S) int; emb_table/w: (V, D) f32; b: (V,) f32 -> (B, S, V) f32."""
    B, S = x.shape
    N = B * S
    V, D = emb_table.shape
    assert w.shape == (V, D)

    idx = x.reshape(N).astype(jnp.int32)

    # Cast parameters once (bf16 storage, f32 accumulation), gather outside
    # the kernel so the kernel body is a pure MXU matmul.
    emb_lo = emb_table.astype(param_dtype)
    w_lo = w.astype(param_dtype)
    e = jnp.take(emb_lo, idx, axis=0)                       # (N, D)

    # Tile sizes: token tile tn (MXU rows), vocab tile tv (multiple of 128).
    tn_eff = min(tn, _round_up(N, 8))
    tv_eff = min(tv, _round_up(V, 128))
    n_pad = _round_up(N, tn_eff)
    v_pad = _round_up(V, tv_eff)

    if n_pad != N:
        e = jnp.pad(e, ((0, n_pad - N), (0, 0)))
    if v_pad != V:
        w_lo = jnp.pad(w_lo, ((0, v_pad - V), (0, 0)))
        b = jnp.pad(b, (0, v_pad - V))
    b2 = b.reshape(1, v_pad).astype(jnp.float32)

    grid = (n_pad // tn_eff, v_pad // tv_eff)

    out = pl.pallas_call(
        w2v_kernel,
        out_shape=jax.ShapeDtypeStruct((n_pad, v_pad), jnp.float32),
        grid=grid,
        in_specs=[
            pl.BlockSpec((tn_eff, D), lambda i, j: (i, 0)),   # embeddings tile
            pl.BlockSpec((tv_eff, D), lambda i, j: (j, 0)),   # weight slab
            pl.BlockSpec((1, tv_eff), lambda i, j: (0, j)),   # bias slab
        ],
        out_specs=pl.BlockSpec((tn_eff, tv_eff), lambda i, j: (i, j)),
        compiler_params=pltpu.CompilerParams(
            dimension_semantics=("parallel", "parallel"),     # megacore on v7x
            vmem_limit_bytes=32 * 1024 * 1024),
    )(e, w_lo, b2)

    return out[:N, :V].reshape(B, S, V)


if __name__ == "__main__":
    # Small, deterministic setup consistent with the module.
    emb_dim = 32
    num_codes = 128
    B, S = 2, 8

    key = jax.random.PRNGKey(0)
    k_emb, k_w, k_b, k_x = jax.random.split(key, 4)

    # nn.Embedding default init: N(0, 1)
    emb_table = jax.random.normal(k_emb, (num_codes, emb_dim), dtype=jnp.float32)
    # nn.Linear default init: U(-1/sqrt(in), 1/sqrt(in)) for weight and bias
    bound = 1.0 / (emb_dim ** 0.5)
    w = jax.random.uniform(k_w, (num_codes, emb_dim), dtype=jnp.float32,
                           minval=-bound, maxval=bound)
    b = jax.random.uniform(k_b, (num_codes,), dtype=jnp.float32,
                           minval=-bound, maxval=bound)

    x = jax.random.randint(k_x, (B, S), 0, num_codes, dtype=jnp.int32)

    out = jax.block_until_ready(word2vec_forward(x, emb_table, w, b))

    # Pure-JAX reference using the same bf16-cast parameters (f32 math),
    # matching the kernel's bf16-storage / f32-accumulation numerics.
    emb_ref = emb_table.astype(jnp.bfloat16).astype(jnp.float32)
    w_ref = w.astype(jnp.bfloat16).astype(jnp.float32)
    ref = jnp.take(emb_ref, x, axis=0) @ w_ref.T + b

    assert out.shape == (B, S, num_codes)
    assert jnp.allclose(out, ref, atol=2e-2, rtol=2e-2), "mismatch vs reference"

    print("KERNEL_OK")
</pallas_src>

<mosaic_0001>
module attributes {stable_mosaic.version = 11 : i64} {
  func.func @w2v_kernel(%arg0: i32, %arg1: i32, %arg2: memref<16x32xbf16, #tpu.memory_space<vmem>>, %arg3: memref<128x32xbf16, #tpu.memory_space<vmem>>, %arg4: memref<1x128xf32, #tpu.memory_space<vmem>>, %arg5: memref<16x128xf32, #tpu.memory_space<vmem>>) attributes {dimension_semantics = [#tpu.dimension_semantics<parallel>, #tpu.dimension_semantics<parallel>], iteration_bounds = array<i64: 1, 1>, scalar_prefetch = 0 : i64, scratch_operands = 0 : i64, tpu.core_type = #tpu.core_type<tc>, window_params = [{transform_indices = @transform_0, window_bounds = array<i64: 16, 32>}, {transform_indices = @transform_1, window_bounds = array<i64: 128, 32>}, {transform_indices = @transform_2, window_bounds = array<i64: 1, 128>}, {transform_indices = @transform_3, window_bounds = array<i64: 16, 128>}]} {
    %c0 = arith.constant 0 : index
    %c0_0 = arith.constant 0 : index
    %0 = vector.load %arg2[%c0, %c0_0] : memref<16x32xbf16, #tpu.memory_space<vmem>>, vector<16x32xbf16>
    %c0_1 = arith.constant 0 : index
    %c0_2 = arith.constant 0 : index
    %1 = vector.load %arg3[%c0_1, %c0_2] : memref<128x32xbf16, #tpu.memory_space<vmem>>, vector<128x32xbf16>
    %cst = arith.constant dense<0.000000e+00> : vector<16x128xf32>
    %2 = tpu.matmul %0, %1, %cst {dimension_numbers = #tpu.dot_dimension_numbers<[1], [1], [0], [0], [0, 0, 1, 0], [], []>} : vector<16x32xbf16>, vector<128x32xbf16>, vector<16x128xf32> -> vector<16x128xf32>
    %c0_3 = arith.constant 0 : index
    %c0_4 = arith.constant 0 : index
    %3 = vector.load %arg4[%c0_3, %c0_4] : memref<1x128xf32, #tpu.memory_space<vmem>>, vector<1x128xf32>
    %4 = vector.broadcast %3 : vector<1x128xf32> to vector<16x128xf32>
    %5 = arith.addf %2, %4 : vector<16x128xf32>
    %c0_5 = arith.constant 0 : index
    %c0_6 = arith.constant 0 : index
    %6 = vector.load %arg5[%c0_5, %c0_6] : memref<16x128xf32, #tpu.memory_space<vmem>>, vector<16x128xf32>
    tpu.vector_store %arg5[%c0_5, %c0_6], %5 {strides = array<i32>} : memref<16x128xf32, #tpu.memory_space<vmem>>, vector<16x128xf32>,
    return
  }
  func.func @transform_0(%arg0: i32, %arg1: i32) -> (i32, i32) {
    %c0_i32 = arith.constant 0 : i32
    %c0_i32_0 = arith.constant 0 : i32
    return %arg0, %c0_i32 : i32, i32
  }
  func.func @transform_1(%arg0: i32, %arg1: i32) -> (i32, i32) {
    %c0_i32 = arith.constant 0 : i32
    %c0_i32_0 = arith.constant 0 : i32
    return %arg1, %c0_i32 : i32, i32
  }
  func.func @transform_2(%arg0: i32, %arg1: i32) -> (i32, i32) {
    %c0_i32 = arith.constant 0 : i32
    %c0_i32_0 = arith.constant 0 : i32
    return %c0_i32, %arg1 : i32, i32
  }
  func.func @transform_3(%arg0: i32, %arg1: i32) -> (i32, i32) {
    %c0_i32 = arith.constant 0 : i32
    return %arg0, %arg1 : i32, i32
  }
}

</mosaic_0001>

<bundles_post_ra>
// kernel: tpu_custom_call.1
= control target key start
LH: loop header
LB: loop body
LE: loop exit
PB: predicated region body
PF: predicated region fallthrough
CT: control target
= control target key end

     0   :  { %vm82_vm0 = vcmask 261120   ;;  %s285_s0 = inlined_call_operand.vmem [shape: bf16[16,32], index: 0, kind: input, shape index: {}]   ;;  %s286_s1 = inlined_call_operand.vmem [shape: bf16[128,32], index: 1, kind: input, shape index: {}]   ;;  %s287_s2 = inlined_call_operand.vmem [shape: f32[1,128], index: 2, kind: input, shape index: {}]   ;;  %s288_s3 = inlined_call_operand.hbm [shape: f32[16,128], index: 3, kind: output, shape index: {}]  }
   0x1   :  { %v189_v0 = vld [vmem:[%s286_s1 + $0x38] sm:$0xff] }
   0x2   :  { %v108_v1 = vsel %vm82_vm0, %v189_v0, 0 }
   0x3   :  { %8 = vsyncpa [#allocation3], 0  ;;  %110 = vmatpush.bf16.xpose.msra.mxu0 %v108_v1  ;;  %v188_v2 = vld [vmem:[%s286_s1 + $0x30] sm:$0xff]  ;;  %v187_v4 = vld [vmem:[%s286_s1 + $0x28] sm:$0xff]  ;;  %s220_s5 = smov [#allocation2]   ;;  %s132_s8 = sshll.u32 %s288_s3, 4  ;;  %s133_s8 = int_to_ptr.hbm [resolvable:$true] %s132_s8 }
   0x4   :  { %v105_v3 = vsel %vm82_vm0, %v188_v2, 0  ;;  %v102_v5 = vsel %vm82_vm0, %v187_v4, 0  ;;  %v186_v6 = vld [vmem:[%s286_s1 + $0x20] sm:$0xff]  ;;  %v185_v8 = vld [vmem:[%s286_s1 + $0x18] sm:$0xff]  ;;  %v184_v10 = vld [vmem:[%s286_s1 + $0x10] sm:$0xff]  ;;  %s130_s6 = sshll.u32 %s220_s5, 4  ;;  %s131_s6 = int_to_ptr.vmem [resolvable:$true] %s130_s6 }
   0x5   :  { %v99_v7 = vsel %vm82_vm0, %v186_v6, 0  ;;  %v96_v9 = vsel %vm82_vm0, %v185_v8, 0  ;;  %v93_v11 = vsel %vm82_vm0, %v184_v10, 0  ;;  %v183_v12 = vld [vmem:[%s286_s1 + $0x8] sm:$0xff]  ;;  %v182_v14 = vld [vmem:[%s286_s1] sm:$0xff]  ;;  %s222_s9 = smov 8  }
   0x6   :  { %v90_v13 = vsel %vm82_vm0, %v183_v12, 0  ;;  %v87_v15 = vsel %vm82_vm0, %v182_v14, 0  ;;  %v181_v16 = vld [vmem:[%s285_s0] sm:$0xff]  ;;  %s221_s0 = smov 128  }
   0x7   :  { %v193_v17 = vld [vmem:[%s287_s2] ss:$0 sm:$0xff] }
   0xb   :  { %111 = vmatpush.bf16.xpose.msra.mxu0 %v105_v3 }
  0x13   :  { %112 = vmatpush.bf16.xpose.msra.mxu0 %v102_v5 }
  0x1b   :  { %113 = vmatpush.bf16.xpose.msra.mxu0 %v99_v7 }
  0x23   :  { %114 = vmatpush.bf16.xpose.msra.mxu0 %v96_v9 }
  0x2b   :  { %115 = vmatpush.bf16.xpose.msra.mxu0 %v93_v11 }
  0x33   :  { %116 = vmatpush.bf16.xpose.msra.mxu0 %v90_v13 }
  0x3b   :  { %117 = vmatpush.bf16.xpose.msra.mxu0 %v87_v15 }
  0x42   :  { %180 = vmatmul.msk.bf16.vlgmr.msra.gmra.mxu0 %vm82_vm0, %v181_v16 }
  0xbf   :  { %v119_v18 = vpop.f32.mrf.mxu0 }
  0xc0   :  { %v120_v19 = vadd.f32 %v193_v17, %v119_v18 }
  0xc2   :  { %124 = vst [vmem:[#allocation2] sm:$0xff] %v120_v19 }
  0xc7   :  { %v121_v20 = vpop.f32.mrf.mxu0 }
  0xc8   :  { %v122_v21 = vadd.f32 %v193_v17, %v121_v20 }
  0xca   :  { %125 = vst [vmem:[#allocation2 + $0x8] sm:$0xff] %v122_v21 }
  0xcb   :  { %138 = dma.vmem_to_hbm [thread:$0]  %s131_s6, 256, %s133_s8, [#allocation3], %s221_s0, %s221_s0, %s222_s9  }
  0xcc   :  { %218 = dma.done.wait [#allocation3], 256  }
  0xcd   :  { %219 = vsyncadd [#allocation3], 4294967040 }
  0xce   :  { %143 = vsyncpa [#allocation3], 1 }

</bundles_post_ra>
